<compile_context>
chip_gen: v5e
topology: v5e:2x2
jax: 0.10.0
libtpu: 0.0.40
codegen_flags: <defaults>
</compile_context>

<pallas_src>
import math

import jax
import jax.numpy as jnp
from jax.experimental import pallas as pl
from jax.experimental.pallas import tpu as pltpu


_LANE = 128                        # lane width of a vreg
_SUBLANE = 8                       # sublane tile
_MAX_TB = 1024                     # 512-1024 row tiles reach >=85% of HBM roofline
_VMEM_BUDGET = 24 * 1024 * 1024    # budget for pipelined x/out buffers + resident weights
_VMEM_LIMIT = 32 * 1024 * 1024     # scoped limit: v7x default; safely under every chip's VMEM


def _round_up(x, m):
    return ((x + m - 1) // m) * m


def _mlp_kernel(x_ref,    # VMEM [TB, D]
                w1_ref,   # VMEM [D, H]
                b1_ref,   # VMEM [1, H]
                w2_ref,   # VMEM [H, 128]  (lane-padded head)
                b2_ref,   # VMEM [1, 128]
                out_ref): # VMEM [TB, 128]
    # fc1 -> ReLU -> fc2, fully fused on the current batch tile; MXU accumulates in f32.
    h = jnp.dot(x_ref[...], w1_ref[...], preferred_element_type=jnp.float32) + b1_ref[...]
    h = jnp.maximum(h, 0.0)  # nn.ReLU
    y = jnp.dot(h, w2_ref[...], preferred_element_type=jnp.float32) + b2_ref[...]
    out_ref[...] = y.astype(out_ref.dtype)


def time_order_classifier(x, w1, b1, w2, b2):
    """Pallas forward: relu(x @ W1 + b1) @ W2 + b2 -> [B, 2] float32."""
    B, D = x.shape
    H = w1.shape[1]
    O = w2.shape[1]

    # Lane-dense output: pad the 2-wide head to a full 128-lane block (one-time, tiny).
    Op = _LANE
    w2p = jnp.pad(w2, ((0, 0), (0, Op - O)))
    b2p = jnp.pad(b2, ((0, 0), (0, Op - O)))

    # Batch tile sized from the VMEM budget, using lane-padded row footprints:
    # 2 double-buffered x tiles + 2 double-buffered out tiles per row, plus the
    # single-buffered resident weights.
    weight_bytes = 4 * (_round_up(D, _SUBLANE) * _round_up(H, _LANE)
                        + _SUBLANE * _round_up(H, _LANE)
                        + _round_up(H, _SUBLANE) * Op
                        + _SUBLANE * Op)
    per_row_bytes = 4 * (2 * _round_up(D, _LANE) + 2 * Op)
    tb_cap = max(_SUBLANE,
                 ((_VMEM_BUDGET - weight_bytes) // per_row_bytes) // _SUBLANE * _SUBLANE)
    tb_cap = min(tb_cap, _MAX_TB)

    # No wrapper-side jnp.pad of x: cdiv grid + ragged last block (OOB output rows
    # are discarded; no cross-row reductions, so garbage OOB input rows are harmless).
    tb = min(tb_cap, _round_up(B, _SUBLANE))
    n_tiles = pl.cdiv(B, tb)

    flops = 2 * B * (D * H + H * Op)
    bytes_accessed = 4 * (B * D + D * H + H + H * Op + Op + B * Op)

    # Constant-index weights/biases: single-buffer (no unused second VMEM copy).
    resident = dict(pipeline_mode=pl.Buffered(1))

    grid_spec = pltpu.PrefetchScalarGridSpec(
        num_scalar_prefetch=0,
        grid=(n_tiles,),
        in_specs=[
            pl.BlockSpec((tb, D), lambda i: (i, 0)),              # x tile (marches over batch)
            pl.BlockSpec((D, H), lambda i: (0, 0), **resident),   # W1 (VMEM-resident)
            pl.BlockSpec((1, H), lambda i: (0, 0), **resident),   # b1
            pl.BlockSpec((H, Op), lambda i: (0, 0), **resident),  # W2 (lane-padded)
            pl.BlockSpec((1, Op), lambda i: (0, 0), **resident),  # b2 (lane-padded)
        ],
        out_specs=pl.BlockSpec((tb, Op), lambda i: (i, 0)),
    )

    out = pl.pallas_call(
        _mlp_kernel,
        out_shape=jax.ShapeDtypeStruct((B, Op), jnp.float32),
        grid_spec=grid_spec,
        compiler_params=pltpu.CompilerParams(
            # Shard batch tiles across v7x's two TensorCores only when there is
            # actually more than one grid step to split.
            dimension_semantics=("parallel",) if n_tiles > 1 else ("arbitrary",),
            vmem_limit_bytes=_VMEM_LIMIT,
        ),
        cost_estimate=pl.CostEstimate(
            flops=flops, transcendentals=0, bytes_accessed=bytes_accessed),
    )(x, w1, b1, w2p, b2p)

    # Drop the lane padding of the 2-wide head.
    return out[:, :O]


def _reference(x, w1, b1, w2, b2):
    return jnp.maximum(x @ w1 + b1, 0.0) @ w2 + b2


if __name__ == "__main__":
    # Small shapes consistent with the module: arbitrary input_size, hidden=32, out=2.
    input_size = 16
    hidden = 32
    out_dim = 2
    batch = 16

    key = jax.random.PRNGKey(0)
    k_x, k_w1, k_b1, k_w2, k_b2 = jax.random.split(key, 5)

    # Deterministic parameter init (nn.Linear ~ U(-1/sqrt(fan_in), 1/sqrt(fan_in))).
    bound1 = 1.0 / math.sqrt(input_size)
    bound2 = 1.0 / math.sqrt(hidden)
    w1 = jax.random.uniform(k_w1, (input_size, hidden), jnp.float32, -bound1, bound1)
    b1 = jax.random.uniform(k_b1, (1, hidden), jnp.float32, -bound1, bound1)
    w2 = jax.random.uniform(k_w2, (hidden, out_dim), jnp.float32, -bound2, bound2)
    b2 = jax.random.uniform(k_b2, (1, out_dim), jnp.float32, -bound2, bound2)

    x = jax.random.normal(k_x, (batch, input_size), dtype=jnp.float32)

    out = jax.block_until_ready(time_order_classifier(x, w1, b1, w2, b2))

    ref = _reference(x, w1, b1, w2, b2)
    assert out.shape == (batch, out_dim)
    assert jnp.allclose(out, ref, atol=1e-5, rtol=1e-5), "mismatch vs pure-JAX reference"

    print("KERNEL_OK")
</pallas_src>

<mosaic_0001>
module attributes {stable_mosaic.version = 11 : i64} {
  func.func @_mlp_kernel(%arg0: i32, %arg1: memref<16x16xf32, #tpu.memory_space<vmem>>, %arg2: memref<16x32xf32, #tpu.memory_space<vmem>>, %arg3: memref<1x32xf32, #tpu.memory_space<vmem>>, %arg4: memref<32x128xf32, #tpu.memory_space<vmem>>, %arg5: memref<1x128xf32, #tpu.memory_space<vmem>>, %arg6: memref<16x128xf32, #tpu.memory_space<vmem>>) attributes {dimension_semantics = [#tpu.dimension_semantics<arbitrary>], iteration_bounds = array<i64: 1>, scalar_prefetch = 0 : i64, scratch_operands = 0 : i64, tpu.core_type = #tpu.core_type<tc>, window_params = [{transform_indices = @transform_0, window_bounds = array<i64: 16, 16>}, {pipeline_mode = #tpu.pipeline_mode<synchronous>, transform_indices = @transform_1, window_bounds = array<i64: 16, 32>}, {pipeline_mode = #tpu.pipeline_mode<synchronous>, transform_indices = @transform_2, window_bounds = array<i64: 1, 32>}, {pipeline_mode = #tpu.pipeline_mode<synchronous>, transform_indices = @transform_3, window_bounds = array<i64: 32, 128>}, {pipeline_mode = #tpu.pipeline_mode<synchronous>, transform_indices = @transform_4, window_bounds = array<i64: 1, 128>}, {transform_indices = @transform_5, window_bounds = array<i64: 16, 128>}]} {
    %c0 = arith.constant 0 : index
    %c0_0 = arith.constant 0 : index
    %0 = vector.load %arg1[%c0, %c0_0] : memref<16x16xf32, #tpu.memory_space<vmem>>, vector<16x16xf32>
    %c0_1 = arith.constant 0 : index
    %c0_2 = arith.constant 0 : index
    %1 = vector.load %arg2[%c0_1, %c0_2] : memref<16x32xf32, #tpu.memory_space<vmem>>, vector<16x32xf32>
    %cst = arith.constant dense<0.000000e+00> : vector<16x32xf32>
    %2 = tpu.matmul %0, %1, %cst {dimension_numbers = #tpu.dot_dimension_numbers<[1], [0], [0], [1], [0, 0, 1, 1], [], []>} : vector<16x16xf32>, vector<16x32xf32>, vector<16x32xf32> -> vector<16x32xf32>
    %c0_3 = arith.constant 0 : index
    %c0_4 = arith.constant 0 : index
    %3 = vector.load %arg3[%c0_3, %c0_4] : memref<1x32xf32, #tpu.memory_space<vmem>>, vector<1x32xf32>
    %4 = vector.broadcast %3 : vector<1x32xf32> to vector<16x32xf32>
    %5 = arith.addf %2, %4 : vector<16x32xf32>
    %cst_5 = arith.constant 0.000000e+00 : f32
    %6 = vector.broadcast %cst_5 : f32 to vector<16x32xf32>
    %7 = arith.maximumf %5, %6 : vector<16x32xf32>
    %c0_6 = arith.constant 0 : index
    %c0_7 = arith.constant 0 : index
    %8 = vector.load %arg4[%c0_6, %c0_7] : memref<32x128xf32, #tpu.memory_space<vmem>>, vector<32x128xf32>
    %cst_8 = arith.constant dense<0.000000e+00> : vector<16x128xf32>
    %9 = tpu.matmul %7, %8, %cst_8 {dimension_numbers = #tpu.dot_dimension_numbers<[1], [0], [0], [1], [0, 0, 1, 1], [], []>} : vector<16x32xf32>, vector<32x128xf32>, vector<16x128xf32> -> vector<16x128xf32>
    %c0_9 = arith.constant 0 : index
    %c0_10 = arith.constant 0 : index
    %10 = vector.load %arg5[%c0_9, %c0_10] : memref<1x128xf32, #tpu.memory_space<vmem>>, vector<1x128xf32>
    %11 = vector.broadcast %10 : vector<1x128xf32> to vector<16x128xf32>
    %12 = arith.addf %9, %11 : vector<16x128xf32>
    %c0_11 = arith.constant 0 : index
    %c0_12 = arith.constant 0 : index
    %13 = vector.load %arg6[%c0_11, %c0_12] : memref<16x128xf32, #tpu.memory_space<vmem>>, vector<16x128xf32>
    tpu.vector_store %arg6[%c0_11, %c0_12], %12 {strides = array<i32>} : memref<16x128xf32, #tpu.memory_space<vmem>>, vector<16x128xf32>,
    return
  }
  func.func @transform_0(%arg0: i32) -> (i32, i32) {
    %c0_i32 = arith.constant 0 : i32
    %c0_i32_0 = arith.constant 0 : i32
    return %arg0, %c0_i32 : i32, i32
  }
  func.func @transform_1(%arg0: i32) -> (i32, i32) {
    %c0_i32 = arith.constant 0 : i32
    %c0_i32_0 = arith.constant 0 : i32
    %c0_i32_1 = arith.constant 0 : i32
    return %c0_i32, %c0_i32_0 : i32, i32
  }
  func.func @transform_2(%arg0: i32) -> (i32, i32) {
    %c0_i32 = arith.constant 0 : i32
    %c0_i32_0 = arith.constant 0 : i32
    %c0_i32_1 = arith.constant 0 : i32
    return %c0_i32, %c0_i32_0 : i32, i32
  }
  func.func @transform_3(%arg0: i32) -> (i32, i32) {
    %c0_i32 = arith.constant 0 : i32
    %c0_i32_0 = arith.constant 0 : i32
    %c0_i32_1 = arith.constant 0 : i32
    return %c0_i32, %c0_i32_0 : i32, i32
  }
  func.func @transform_4(%arg0: i32) -> (i32, i32) {
    %c0_i32 = arith.constant 0 : i32
    %c0_i32_0 = arith.constant 0 : i32
    %c0_i32_1 = arith.constant 0 : i32
    return %c0_i32, %c0_i32_0 : i32, i32
  }
  func.func @transform_5(%arg0: i32) -> (i32, i32) {
    %c0_i32 = arith.constant 0 : i32
    %c0_i32_0 = arith.constant 0 : i32
    return %arg0, %c0_i32 : i32, i32
  }
}

</mosaic_0001>

<bundles_post_ra>
// kernel: tpu_custom_call.1
= control target key start
LH: loop header
LB: loop body
LE: loop exit
PB: predicated region body
PF: predicated region fallthrough
CT: control target
= control target key end

     0   :  { %10 = vsyncpa [#allocation3], 0  ;;  %s354_s0 = inlined_call_operand.hbm [shape: f32[16,16], index: 0, kind: input, shape index: {}]   ;;  %s355_s1 = inlined_call_operand.hbm [shape: f32[16,32], index: 1, kind: input, shape index: {}]   ;;  %s356_s2 = inlined_call_operand.vmem [shape: f32[1,32], index: 2, kind: input, shape index: {}]   ;;  %s357_s3 = inlined_call_operand.hbm [shape: f32[32,128], index: 3, kind: input, shape index: {}]   ;;  %s358_s4 = inlined_call_operand.vmem [shape: f32[1,128], index: 4, kind: input, shape index: {}]   ;;  %s359_s5 = inlined_call_operand.hbm [shape: f32[16,128], index: 5, kind: output, shape index: {}]  }
   0x1   :  { %11 = vsyncpa [#allocation6], 0 }
   0x2   :  { %12 = vsyncpa [#allocation4], 0  ;;  %s30_s20 = sshll.u32 %s355_s1, 4  ;;  %s288_s21 = smov [#allocation5]   ;;  %s31_s20 = int_to_ptr.hbm [resolvable:$true] %s30_s20 }
   0x3   :  { %s32_s22 = sshll.u32 %s288_s21, 4  ;;  %s17_s25 = sshll.u32 %s354_s0, 4  ;;  %s33_s22 = int_to_ptr.vmem [resolvable:$true] %s32_s22  ;;  %s18_s25 = int_to_ptr.hbm [resolvable:$true] %s17_s25 }
   0x4   :  { %s289_s26 = smov 128   ;;  %s290_s27 = smov 8  }
   0x5   :  { %38 = dma.hbm_to_vmem [thread:$0]  %s31_s20, 256, %s33_s22, [#allocation6], %s289_s26, %s289_s26, %s290_s27  }
   0x6   :  { %s291_s28 = smov [#allocation2]   ;;  %s45_s1 = sshll.u32 %s357_s3, 4  ;;  %s46_s1 = int_to_ptr.hbm [resolvable:$true] %s45_s1 }
   0x7   :  { %s19_s29 = sshll.u32 %s291_s28, 4  ;;  %s292_s0 = smov [#allocation7]   ;;  %s20_s29 = int_to_ptr.vmem [resolvable:$true] %s19_s29 }
   0x8   :  { %25 = dma.hbm_to_vmem [thread:$0]  %s18_s25, 256, %s20_s29, [#allocation3], %s289_s26, %s289_s26, %s290_s27  }
   0x9   :  { %s47_s7 = sshll.u32 %s292_s0, 4  ;;  %s48_s7 = int_to_ptr.vmem [resolvable:$true] %s47_s7 }
   0xa   :  { %53 = dma.hbm_to_vmem [thread:$0]  %s46_s1, 512, %s48_s7, [#allocation6], %s289_s26, %s289_s26, %s290_s27  }
   0xb   :  { %282 = dma.done.wait [#allocation3], 256  }
   0xc   :  { %283 = vsyncadd [#allocation3], 4294967040 }
   0xd   :  { %284 = dma.done.wait [#allocation6], 768  }
   0xe   :  { %285 = vsyncadd [#allocation6], 4294966528  ;;  %v71_v0 = vld [vmem:[#allocation5 + $0x8] sm:$0xff]  ;;  %v70_v1 = vld [vmem:[#allocation5] sm:$0xff]  ;;  %vm76_vm0 = vcmask 130048   ;;  %vm116_vm1 = vcmask 261120  }
   0xf   :  { %v69_v2 = vld [vmem:[#allocation2 + $0x8] sm:$0xff]  ;;  %172 = vmatpush.msra.mxu3 %v71_v0  ;;  %97 = vmatpush.msra.mxu0 %v71_v0  ;;  %v68_v3 = vld [vmem:[#allocation2] sm:$0xff]  ;;  %v111_v4 = vld [vmem:[#allocation7 + $0x18] sm:$0xff]  ;;  %s293_s11 = smov [#allocation8]   ;;  %s154_s14 = sshll.u32 %s359_s5, 4  ;;  %s155_s14 = int_to_ptr.hbm [resolvable:$true] %s154_s14 }
  0x10   :  { %174 = vmatpush.msra.mxu2 %v111_v4  ;;  %135 = vmatpush.msra.mxu1 %v111_v4  ;;  %v110_v5 = vld [vmem:[#allocation7 + $0x10] sm:$0xff]  ;;  %v109_v6 = vld [vmem:[#allocation7 + $0x8] sm:$0xff]  ;;  %v108_v7 = vld [vmem:[#allocation7] sm:$0xff]  ;;  %s152_s12 = sshll.u32 %s293_s11, 4  ;;  %s153_s12 = int_to_ptr.vmem [resolvable:$true] %s152_s12 }
  0x11   :  { %173 = vmatpush.msra.mxu3 %v70_v1  ;;  %98 = vmatpush.msra.mxu0 %v70_v1  ;;  %v184_v8 = vld [vmem:[%s356_s2] ss:$0 sm:$0xff] }
  0x12   :  { %169 = vmatmul.msk.f32.vlgmr.msra.gmra.mxu3 %vm76_vm0, %v69_v2  ;;  %168 = vmatmul.msk.f32.vlgmr.msra.gmra.mxu0 %vm76_vm0, %v68_v3  ;;  %v185_v15 = vld [vmem:[%s358_s4] ss:$0 sm:$0xff] }
  0x13   :  { %175 = vmatpush.msra.mxu2 %v110_v5  ;;  %136 = vmatpush.msra.mxu1 %v110_v5 }
  0x15   :  { %176 = vmatpush.msra.mxu2 %v109_v6  ;;  %137 = vmatpush.msra.mxu1 %v109_v6 }
  0x17   :  { %177 = vmatpush.msra.mxu2 %v108_v7  ;;  %138 = vmatpush.msra.mxu1 %v108_v7 }
  0x8f   :  { %v100_v9 = vpop.f32.mrf.mxu0 }
  0x90   :  { %v101_v10 = vadd.f32 %v184_v8, %v100_v9 }
  0x92   :  { %v106_v11 = vmax.f32 %v101_v10, 0.0 }
  0x94   :  { %170 = vmatmul.msk.f32.vlgmr.msra.gmra.mxu1 %vm116_vm1, %v106_v11 }
  0x95   :  { %v103_v12 = vpop.f32.mrf.mxu3 }
  0x96   :  { %v104_v13 = vadd.f32 %v184_v8, %v103_v12 }
  0x98   :  { %v107_v14 = vmax.f32 %v104_v13, 0.0 }
  0x9a   :  { %171 = vmatmul.msk.f32.vlgmr.msra.gmra.mxu2 %vm116_vm1, %v107_v14 }
 0x111   :  { %v140_v16 = vpop.f32.mrf.mxu1 }
 0x112   :  { %v141_v17 = vadd.f32 %v185_v15, %v140_v16 }
 0x114   :  { %146 = vst [vmem:[#allocation8] sm:$0xff] %v141_v17 }
 0x11d   :  { %v143_v18 = vpop.f32.mrf.mxu2 }
 0x11e   :  { %v144_v19 = vadd.f32 %v185_v15, %v143_v18 }
 0x120   :  { %147 = vst [vmem:[#allocation8 + $0x8] sm:$0xff] %v144_v19 }
 0x121   :  { %160 = dma.vmem_to_hbm [thread:$0]  %s153_s12, 256, %s155_s14, [#allocation4], %s289_s26, %s289_s26, %s290_s27  }
 0x122   :  { %286 = dma.done.wait [#allocation4], 256  }
 0x123   :  { %287 = vsyncadd [#allocation4], 4294967040 }
 0x124   :  { %165 = vsyncpa [#allocation3], 1 }
 0x125   :  { %166 = vsyncpa [#allocation6], 1 }
 0x126   :  { %167 = vsyncpa [#allocation4], 1 }

</bundles_post_ra>
